<compile_context>
chip_gen: v7x
topology: tpu7x:2x2x1
jax: 0.10.0
libtpu: 0.0.40
codegen_flags: <defaults>
</compile_context>

<pallas_src>
import jax
import jax.numpy as jnp
from jax.experimental import pallas as pl
from jax.experimental.pallas import tpu as pltpu


def _round_up(n, m):
    return ((n + m - 1) // m) * m


def actor_kernel(xT_ref, w1_ref, b1_ref, w2_ref, b2_ref, w3_ref, b3_ref, oT_ref):
    # Batch on the lane (last) axis. Weights are (out, in); biases (out, 1).
    xT = xT_ref[...]                                                        # (S, TB)
    h1 = jnp.dot(w1_ref[...], xT, preferred_element_type=jnp.float32)      # (H, TB)
    h1 = jnp.maximum(h1 + b1_ref[...], 0.0)
    h2 = jnp.dot(w2_ref[...], h1, preferred_element_type=jnp.float32)      # (H, TB)
    h2 = jnp.maximum(h2 + b2_ref[...], 0.0)
    h3 = jnp.dot(w3_ref[...], h2, preferred_element_type=jnp.float32)      # (A, TB)
    h3 = jnp.tanh(h3 + b3_ref[...])
    oT_ref[...] = ((h3 + 1.0) * 90.0).astype(oT_ref.dtype)


def actor_forward(x, params, *, tile_b=256):
    """x: (B, state_size) float32. params: w1,b1,w2,b2,w3,b3 in PyTorch layout
    (w: (out, in), b: (out, 1)). Returns (B, action_size) float32."""
    w1, b1 = params["w1"], params["b1"]
    w2, b2 = params["w2"], params["b2"]
    w3, b3 = params["w3"], params["b3"]
    B, S = x.shape
    A = w3.shape[0]

    # Batch tile: lane-aligned (multiple of 128), capped at tile_b.
    tb = min(tile_b, _round_up(B, 128))
    b_pad = _round_up(B, tb)
    grid = (b_pad // tb,)

    # Pad batch with zeros and transpose so batch is the lane (last) axis.
    xT = jnp.zeros((S, b_pad), x.dtype).at[:, :B].set(x.T)

    # Weights/biases: full-array blocks, constant index_map -> VMEM-resident
    # across all grid iterations.
    def resident(a):
        return pl.BlockSpec(a.shape, lambda i: tuple(0 for _ in a.shape))

    oT = pl.pallas_call(
        actor_kernel,
        out_shape=jax.ShapeDtypeStruct((A, b_pad), jnp.float32),
        grid=grid,
        in_specs=[
            pl.BlockSpec((S, tb), lambda i: (0, i)),   # activations, tiled on batch
            resident(w1), resident(b1),
            resident(w2), resident(b2),
            resident(w3), resident(b3),
        ],
        out_specs=pl.BlockSpec((A, tb), lambda i: (0, i)),
        compiler_params=pltpu.CompilerParams(
            dimension_semantics=("parallel",),          # megacore sharding on v7x
        ),
    )(xT, w1, b1, w2, b2, w3, b3)

    # Back to (B, action_size); drop batch padding.
    return oT[:, :B].T


def init_params(key, state_size, action_size, hidden_size):
    """PyTorch nn.Linear-style init: U(-1/sqrt(fan_in), 1/sqrt(fan_in)).
    Weights stored (out, in), biases (out, 1) — same layout as torch."""
    def linear(key, fan_in, fan_out):
        kw, kb = jax.random.split(key)
        bound = 1.0 / jnp.sqrt(jnp.float32(fan_in))
        w = jax.random.uniform(kw, (fan_out, fan_in), jnp.float32, -bound, bound)
        b = jax.random.uniform(kb, (fan_out, 1), jnp.float32, -bound, bound)
        return w, b

    k1, k2, k3 = jax.random.split(key, 3)
    w1, b1 = linear(k1, state_size, hidden_size)
    w2, b2 = linear(k2, hidden_size, hidden_size)
    w3, b3 = linear(k3, hidden_size, action_size)
    return {"w1": w1, "b1": b1, "w2": w2, "b2": b2, "w3": w3, "b3": b3}


def actor_reference(x, p):
    h1 = jnp.maximum(x @ p["w1"].T + p["b1"].T, 0.0)
    h2 = jnp.maximum(h1 @ p["w2"].T + p["b2"].T, 0.0)
    h3 = jnp.tanh(h2 @ p["w3"].T + p["b3"].T)
    return (h3 + 1.0) * 90.0


if __name__ == "__main__":
    batch = 2
    state_size = 8
    action_size = 4
    hidden_size = 128   # matches the module's default hidden_size

    key = jax.random.PRNGKey(0)
    kx, kp = jax.random.split(key)
    x = jax.random.normal(kx, (batch, state_size), jnp.float32)
    params = init_params(kp, state_size, action_size, hidden_size)

    out = actor_forward(x, params)
    out = jax.block_until_ready(out)

    ref = actor_reference(x, params)
    assert out.shape == (batch, action_size)
    assert jnp.allclose(out, ref, atol=1e-4, rtol=1e-4)

    print("KERNEL_OK")
</pallas_src>

<mosaic_0001>
module attributes {stable_mosaic.version = 11 : i64} {
  func.func @actor_kernel(%arg0: i32, %arg1: memref<8x128xf32, #tpu.memory_space<vmem>>, %arg2: memref<128x8xf32, #tpu.memory_space<vmem>>, %arg3: memref<128x1xf32, #tpu.memory_space<vmem>>, %arg4: memref<128x128xf32, #tpu.memory_space<vmem>>, %arg5: memref<128x1xf32, #tpu.memory_space<vmem>>, %arg6: memref<4x128xf32, #tpu.memory_space<vmem>>, %arg7: memref<4x1xf32, #tpu.memory_space<vmem>>, %arg8: memref<4x128xf32, #tpu.memory_space<vmem>>) attributes {dimension_semantics = [#tpu.dimension_semantics<parallel>], iteration_bounds = array<i64: 1>, scalar_prefetch = 0 : i64, scratch_operands = 0 : i64, tpu.core_type = #tpu.core_type<tc>, window_params = [{transform_indices = @transform_0, window_bounds = array<i64: 8, 128>}, {pipeline_mode = #tpu.pipeline_mode<synchronous>, transform_indices = @transform_1, window_bounds = array<i64: 128, 8>}, {pipeline_mode = #tpu.pipeline_mode<synchronous>, transform_indices = @transform_2, window_bounds = array<i64: 128, 1>}, {pipeline_mode = #tpu.pipeline_mode<synchronous>, transform_indices = @transform_3, window_bounds = array<i64: 128, 128>}, {pipeline_mode = #tpu.pipeline_mode<synchronous>, transform_indices = @transform_4, window_bounds = array<i64: 128, 1>}, {pipeline_mode = #tpu.pipeline_mode<synchronous>, transform_indices = @transform_5, window_bounds = array<i64: 4, 128>}, {pipeline_mode = #tpu.pipeline_mode<synchronous>, transform_indices = @transform_6, window_bounds = array<i64: 4, 1>}, {transform_indices = @transform_7, window_bounds = array<i64: 4, 128>}]} {
    %c0 = arith.constant 0 : index
    %c0_0 = arith.constant 0 : index
    %0 = vector.load %arg1[%c0, %c0_0] : memref<8x128xf32, #tpu.memory_space<vmem>>, vector<8x128xf32>
    %c0_1 = arith.constant 0 : index
    %c0_2 = arith.constant 0 : index
    %1 = vector.load %arg2[%c0_1, %c0_2] : memref<128x8xf32, #tpu.memory_space<vmem>>, vector<128x8xf32>
    %cst = arith.constant dense<0.000000e+00> : vector<128x128xf32>
    %2 = tpu.matmul %1, %0, %cst {dimension_numbers = #tpu.dot_dimension_numbers<[1], [0], [0], [1], [0, 0, 1, 1], [], []>} : vector<128x8xf32>, vector<8x128xf32>, vector<128x128xf32> -> vector<128x128xf32>
    %c0_3 = arith.constant 0 : index
    %c0_4 = arith.constant 0 : index
    %3 = vector.load %arg3[%c0_3, %c0_4] : memref<128x1xf32, #tpu.memory_space<vmem>>, vector<128x1xf32>
    %4 = vector.broadcast %3 : vector<128x1xf32> to vector<128x128xf32>
    %5 = arith.addf %2, %4 : vector<128x128xf32>
    %cst_5 = arith.constant 0.000000e+00 : f32
    %6 = vector.broadcast %cst_5 : f32 to vector<128x128xf32>
    %7 = arith.maximumf %5, %6 : vector<128x128xf32>
    %c0_6 = arith.constant 0 : index
    %c0_7 = arith.constant 0 : index
    %8 = vector.load %arg4[%c0_6, %c0_7] : memref<128x128xf32, #tpu.memory_space<vmem>>, vector<128x128xf32>
    %cst_8 = arith.constant dense<0.000000e+00> : vector<128x128xf32>
    %9 = tpu.matmul %8, %7, %cst_8 {dimension_numbers = #tpu.dot_dimension_numbers<[1], [0], [0], [1], [0, 0, 1, 1], [], []>} : vector<128x128xf32>, vector<128x128xf32>, vector<128x128xf32> -> vector<128x128xf32>
    %c0_9 = arith.constant 0 : index
    %c0_10 = arith.constant 0 : index
    %10 = vector.load %arg5[%c0_9, %c0_10] : memref<128x1xf32, #tpu.memory_space<vmem>>, vector<128x1xf32>
    %11 = vector.broadcast %10 : vector<128x1xf32> to vector<128x128xf32>
    %12 = arith.addf %9, %11 : vector<128x128xf32>
    %cst_11 = arith.constant 0.000000e+00 : f32
    %13 = vector.broadcast %cst_11 : f32 to vector<128x128xf32>
    %14 = arith.maximumf %12, %13 : vector<128x128xf32>
    %c0_12 = arith.constant 0 : index
    %c0_13 = arith.constant 0 : index
    %15 = vector.load %arg6[%c0_12, %c0_13] : memref<4x128xf32, #tpu.memory_space<vmem>>, vector<4x128xf32>
    %cst_14 = arith.constant dense<0.000000e+00> : vector<4x128xf32>
    %16 = tpu.matmul %15, %14, %cst_14 {dimension_numbers = #tpu.dot_dimension_numbers<[1], [0], [0], [1], [0, 0, 1, 1], [], []>} : vector<4x128xf32>, vector<128x128xf32>, vector<4x128xf32> -> vector<4x128xf32>
    %c0_15 = arith.constant 0 : index
    %c0_16 = arith.constant 0 : index
    %17 = vector.load %arg7[%c0_15, %c0_16] : memref<4x1xf32, #tpu.memory_space<vmem>>, vector<4x1xf32>
    %18 = vector.broadcast %17 : vector<4x1xf32> to vector<4x128xf32>
    %19 = arith.addf %16, %18 : vector<4x128xf32>
    %20 = math.tanh %19 : vector<4x128xf32>
    %cst_17 = arith.constant 1.000000e+00 : f32
    %21 = vector.broadcast %cst_17 : f32 to vector<4x128xf32>
    %22 = arith.addf %20, %21 : vector<4x128xf32>
    %cst_18 = arith.constant 9.000000e+01 : f32
    %23 = vector.broadcast %cst_18 : f32 to vector<4x128xf32>
    %24 = arith.mulf %22, %23 : vector<4x128xf32>
    %c0_19 = arith.constant 0 : index
    %c0_20 = arith.constant 0 : index
    %25 = vector.load %arg8[%c0_19, %c0_20] : memref<4x128xf32, #tpu.memory_space<vmem>>, vector<4x128xf32>
    tpu.vector_store %arg8[%c0_19, %c0_20], %24 {strides = array<i32>} : memref<4x128xf32, #tpu.memory_space<vmem>>, vector<4x128xf32>,
    return
  }
  func.func @transform_0(%arg0: i32) -> (i32, i32) {
    %c0_i32 = arith.constant 0 : i32
    %c0_i32_0 = arith.constant 0 : i32
    return %c0_i32, %arg0 : i32, i32
  }
  func.func @transform_1(%arg0: i32) -> (i32, i32) {
    %c0_i32 = arith.constant 0 : i32
    %c0_i32_0 = arith.constant 0 : i32
    %c0_i32_1 = arith.constant 0 : i32
    return %c0_i32, %c0_i32_0 : i32, i32
  }
  func.func @transform_2(%arg0: i32) -> (i32, i32) {
    %c0_i32 = arith.constant 0 : i32
    %c0_i32_0 = arith.constant 0 : i32
    %c0_i32_1 = arith.constant 0 : i32
    return %c0_i32, %c0_i32_0 : i32, i32
  }
  func.func @transform_3(%arg0: i32) -> (i32, i32) {
    %c0_i32 = arith.constant 0 : i32
    %c0_i32_0 = arith.constant 0 : i32
    %c0_i32_1 = arith.constant 0 : i32
    return %c0_i32, %c0_i32_0 : i32, i32
  }
  func.func @transform_4(%arg0: i32) -> (i32, i32) {
    %c0_i32 = arith.constant 0 : i32
    %c0_i32_0 = arith.constant 0 : i32
    %c0_i32_1 = arith.constant 0 : i32
    return %c0_i32, %c0_i32_0 : i32, i32
  }
  func.func @transform_5(%arg0: i32) -> (i32, i32) {
    %c0_i32 = arith.constant 0 : i32
    %c0_i32_0 = arith.constant 0 : i32
    %c0_i32_1 = arith.constant 0 : i32
    return %c0_i32, %c0_i32_0 : i32, i32
  }
  func.func @transform_6(%arg0: i32) -> (i32, i32) {
    %c0_i32 = arith.constant 0 : i32
    %c0_i32_0 = arith.constant 0 : i32
    %c0_i32_1 = arith.constant 0 : i32
    return %c0_i32, %c0_i32_0 : i32, i32
  }
  func.func @transform_7(%arg0: i32) -> (i32, i32) {
    %c0_i32 = arith.constant 0 : i32
    %c0_i32_0 = arith.constant 0 : i32
    return %c0_i32, %arg0 : i32, i32
  }
}

</mosaic_0001>

<bundles_post_ra>
// kernel: tpu_custom_call.1
= control target key start
LH: loop header
LB: loop body
LE: loop exit
PB: predicated region body
PF: predicated region fallthrough
CT: control target
= control target key end

     0   :  { %vm140_vm0 = vcmask 64512   ;;  %v1006_v4 = vmov 0   ;;  %s1288_s0 = inlined_call_operand.vmem [shape: f32[8,128], index: 0, kind: input, shape index: {}]   ;;  %s1289_s1 = inlined_call_operand.vmem [shape: f32[128,8], index: 1, kind: input, shape index: {}]   ;;  %s1290_s2 = inlined_call_operand.vmem [shape: f32[128,1], index: 2, kind: input, shape index: {}]   ;;  %s1291_s3 = inlined_call_operand.vmem [shape: f32[128,128], index: 3, kind: input, shape index: {}]   ;;  %s1292_s4 = inlined_call_operand.vmem [shape: f32[128,1], index: 4, kind: input, shape index: {}]   ;;  %s1293_s5 = inlined_call_operand.vmem [shape: f32[4,128], index: 5, kind: input, shape index: {}]   ;;  %s1294_s6 = inlined_call_operand.vmem [shape: f32[4,1], index: 6, kind: input, shape index: {}]   ;;  %s1295_s7 = inlined_call_operand.hbm [shape: f32[4,128], index: 7, kind: output, shape index: {}]  }
   0x1   :  { %v27_v0 = vld [vmem:[%s1288_s0] sm:$0xff]  ;;  %v29_v2 = vld [vmem:[%s1289_s1 + $0x8] sm:$0xff]  ;;  %v30_v3 = vld [vmem:[%s1289_s1 + $0x10] sm:$0xff]  ;;  %978 = vset.pattern.permute.xlu0 %v1006_v4  ;;  %979 = vset.pattern.permute.xlu1 %v1006_v4 }
   0x2   :  { %v28_v1 = vld [vmem:[%s1289_s1] sm:$0xff]  ;;  %800 = vmatprep.subr.mxu0 %v27_v0  ;;  %v31_v6 = vld [vmem:[%s1289_s1 + $0x18] sm:$0xff]  ;;  %v45_v8 = vld [vmem:[%s1290_s2 + $0x8] sm:$0xff] }
   0x3   :  { %802 = vmatprep.mubr.msk.f32.mxu0 %vm140_vm0, %v28_v1  ;;  %801 = vmatpush3.msra.mxu0 %v27_v0  ;;  %v44_v5 = vld [vmem:[%s1290_s2] sm:$0xff]  ;;  %v46_v9 = vld [vmem:[%s1290_s2 + $0x10] sm:$0xff]  ;;  %v47_v10 = vld [vmem:[%s1290_s2 + $0x18] sm:$0xff] }
   0x4   :  { %803 = vmatmul.mubr.msk.f32.vlgmr.msra.gmra.mrb[0].mxu0 %vm140_vm0, %v29_v2  ;;  %62 = vperm.xlu0 %978, %v44_v5   ;;  %v32_v7 = vld [vmem:[%s1289_s1 + $0x20] sm:$0xff]  ;;  %v33_v11 = vld [vmem:[%s1289_s1 + $0x28] sm:$0xff]  ;;  %v34_v12 = vld [vmem:[%s1289_s1 + $0x30] sm:$0xff] }
   0x5   :  { %805 = vmatprep.mubr.msk.f32.mxu0 %vm140_vm0, %v30_v3  ;;  %72 = vperm.xlu1 %979, %v46_v9   ;;  %v48_v13 = vld [vmem:[%s1290_s2 + $0x20] sm:$0xff]  ;;  %v49_v14 = vld [vmem:[%s1290_s2 + $0x28] sm:$0xff]  ;;  %v35_v15 = vld [vmem:[%s1289_s1 + $0x38] sm:$0xff] }
   0x6   :  { %v36_v16 = vld [vmem:[%s1289_s1 + $0x40] sm:$0xff]  ;;  %v50_v17 = vld [vmem:[%s1290_s2 + $0x30] sm:$0xff]  ;;  %v51_v18 = vld [vmem:[%s1290_s2 + $0x38] sm:$0xff] }
   0x7   :  { %v37_v19 = vld [vmem:[%s1289_s1 + $0x48] sm:$0xff] }
   0x8   :  { %806 = vmatmul.mubr.msk.f32.gmra.mrb[2].mxu0 %vm140_vm0, %v31_v6  ;;  %67 = vperm.xlu0 %978, %v45_v8  }
   0x9   :  { %808 = vmatprep.mubr.msk.f32.mxu0 %vm140_vm0, %v32_v7  ;;  %77 = vperm.xlu1 %979, %v47_v10  }
   0xc   :  { %809 = vmatmul.mubr.msk.f32.gmra.mrb[4].mxu0 %vm140_vm0, %v33_v11  ;;  %82 = vperm.xlu0 %978, %v48_v13  }
   0xd   :  { %811 = vmatprep.mubr.msk.f32.mxu0 %vm140_vm0, %v34_v12  ;;  %87 = vperm.xlu1 %979, %v49_v14  }
  0x10   :  { %812 = vmatmul.mubr.msk.f32.gmra.mrb[6].mxu0 %vm140_vm0, %v35_v15  ;;  %92 = vperm.xlu0 %978, %v50_v17  }
  0x11   :  { %814 = vmatprep.mubr.msk.f32.mxu0 %vm140_vm0, %v36_v16 }
  0x12   :  { %12 = vsyncpa [#allocation3], 0  ;;  %v38_v20 = vld [vmem:[%s1289_s1 + $0x50] sm:$0xff]  ;;  %v52_v21 = vld [vmem:[%s1290_s2 + $0x40] sm:$0xff]  ;;  %97 = vperm.xlu1 %979, %v51_v18   ;;  %vm1008_vm1 = vmmov 0   ;;  %s1010_s27 = smov [#allocation2]  }
  0x13   :  { %v53_v22 = vld [vmem:[%s1290_s2 + $0x48] sm:$0xff]  ;;  %v39_v23 = vld [vmem:[%s1289_s1 + $0x58] sm:$0xff]  ;;  %v40_v24 = vld [vmem:[%s1289_s1 + $0x60] sm:$0xff]  ;;  %s710_s28 = sshll.u32 %s1010_s27, 4  ;;  %s711_s28 = int_to_ptr.vmem [resolvable:$true] %s710_s28 }
  0x14   :  { %815 = vmatmul.mubr.msk.f32.gmra.mrb[8].mxu0 %vm140_vm0, %v37_v19  ;;  %102 = vperm.xlu0 %978, %v52_v21   ;;  %v54_v25 = vld [vmem:[%s1290_s2 + $0x50] sm:$0xff]  ;;  %v55_v26 = vld [vmem:[%s1290_s2 + $0x58] sm:$0xff]  ;;  %v41_v27 = vld [vmem:[%s1289_s1 + $0x68] sm:$0xff]  ;;  %s982_s29 = scalar_lea.vmem %s711_s28, 64  ;;  %p987_p1 = scmp.lt.s32.totalorder %s711_s28, %s711_s28 }
  0x15   :  { %817 = vmatprep.mubr.msk.f32.mxu0 %vm140_vm0, %v38_v20  ;;  %v42_v28 = vld [vmem:[%s1289_s1 + $0x70] sm:$0xff]  ;;  %v56_v29 = vld [vmem:[%s1290_s2 + $0x60] sm:$0xff]  ;;  %v57_v30 = vld [vmem:[%s1290_s2 + $0x68] sm:$0xff]  ;;  %p983_p0 = scmp.ne.s32.totalorder %s711_s28, %s982_s29  ;;  %p988_p2 = scmp.lt.s32.totalorder %s982_s29, %s982_s29 }
  0x16   :  { %107 = vperm.xlu1 %979, %v53_v22   ;;  %v43_v31 = vld [vmem:[%s1289_s1 + $0x78] sm:$0xff]  ;;  %v58_v32 = vld [vmem:[%s1290_s2 + $0x70] sm:$0xff]  ;;  %v366_v34 = vld [vmem:[%s1292_s4] sm:$0xff] }
  0x17   :  { %v59_v33 = vld [vmem:[%s1290_s2 + $0x78] sm:$0xff]  ;;  %v367_v35 = vld [vmem:[%s1292_s4 + $0x8] sm:$0xff]  ;;  %v368_v36 = vld [vmem:[%s1292_s4 + $0x10] sm:$0xff]  ;;  %p989_p3 = por %p988_p2, %p987_p1 }
  0x18   :  { %818 = vmatmul.mubr.msk.f32.gmra.mrb[10].mxu0 %vm140_vm0, %v39_v23  ;;  %112 = vperm.xlu0 %978, %v54_v25   ;;  %v369_v37 = vld [vmem:[%s1292_s4 + $0x18] sm:$0xff]  ;;  %v370_v38 = vld [vmem:[%s1292_s4 + $0x20] sm:$0xff]  ;;  %v371_v39 = vld [vmem:[%s1292_s4 + $0x28] sm:$0xff] }
  0x19   :  { %820 = vmatprep.mubr.msk.f32.mxu0 %vm140_vm0, %v40_v24  ;;  %v372_v40 = vld [vmem:[%s1292_s4 + $0x30] sm:$0xff]  ;;  %v373_v41 = vld [vmem:[%s1292_s4 + $0x38] sm:$0xff]  ;;  %v374_v42 = vld [vmem:[%s1292_s4 + $0x40] sm:$0xff]  ;;  %p990_p4 = pnand %p989_p3, %p983_p0 }
  0x1a   :  { %117 = vperm.xlu1 %979, %v55_v26   ;;  %v375_v43 = vld [vmem:[%s1292_s4 + $0x48] sm:$0xff]  ;;  %v376_v44 = vld [vmem:[%s1292_s4 + $0x50] sm:$0xff]  ;;  %v377_v45 = vld [vmem:[%s1292_s4 + $0x58] sm:$0xff] }
  0x1b   :  { %v378_v46 = vld [vmem:[%s1292_s4 + $0x60] sm:$0xff]  ;;  %v379_v47 = vld [vmem:[%s1292_s4 + $0x68] sm:$0xff]  ;;  %v380_v48 = vld [vmem:[%s1292_s4 + $0x70] sm:$0xff] }
  0x1c   :  { %821 = vmatmul.mubr.msk.f32.gmra.mrb[12].mxu0 %vm140_vm0, %v41_v27  ;;  %122 = vperm.xlu0 %978, %v56_v29   ;;  %v381_v49 = vld [vmem:[%s1292_s4 + $0x78] sm:$0xff]  ;;  %v624_v50 = vld [vmem:[%s1294_s6] sm:$0xf] }
  0x1d   :  { %823 = vmatprep.mubr.msk.f32.mxu0 %vm140_vm0, %v42_v28  ;;  %v350_v51 = vld [vmem:[%s1291_s3] sm:$0xff] }
  0x1e   :  { %127 = vperm.xlu1 %979, %v57_v30   ;;  %858 = vmatprep.mubr.f32.mxu1 %v350_v51 }
  0x20   :  { %824 = vmatmul.mubr.msk.f32.gmra.mrb[14].mxu0 %vm140_vm0, %v43_v31  ;;  %132 = vperm.xlu0 %978, %v58_v32  }
  0x22   :  { %137 = vperm.xlu1 %979, %v59_v33  }
  0x24   :  { %384 = vperm.xlu0 %978, %v366_v34  }
  0x26   :  { %389 = vperm.xlu1 %979, %v367_v35  }
  0x28   :  { %394 = vperm.xlu0 %978, %v368_v36  }
  0x2a   :  { %399 = vperm.xlu1 %979, %v369_v37  }
  0x2c   :  { %404 = vperm.xlu0 %978, %v370_v38  }
  0x2e   :  { %409 = vperm.xlu1 %979, %v371_v39  }
  0x30   :  { %414 = vperm.xlu0 %978, %v372_v40  }
  0x32   :  { %419 = vperm.xlu1 %979, %v373_v41  }
  0x34   :  { %424 = vperm.xlu0 %978, %v374_v42  }
  0x36   :  { %429 = vperm.xlu1 %979, %v375_v43  }
  0x38   :  { %434 = vperm.xlu0 %978, %v376_v44  }
  0x3a   :  { %439 = vperm.xlu1 %979, %v377_v45  }
  0x3c   :  { %444 = vperm.xlu0 %978, %v378_v46  }
  0x3e   :  { %449 = vperm.xlu1 %979, %v379_v47  }
  0x40   :  { %454 = vperm.xlu0 %978, %v380_v48  }
  0x42   :  { %459 = vperm.xlu1 %979, %v381_v49  }
  0x44   :  { %627 = vperm.xlu0 %978, %v624_v50  }
  0x83   :  { %v63_v53 = vpop.permute.xlu0 %62 }
  0x84   :  { %v73_v52 = vpop.permute.xlu1 %72 }
  0x87   :  { %v68_v55 = vpop.permute.xlu0 %67 }
  0x88   :  { %v78_v54 = vpop.permute.xlu1 %77 }
  0x8b   :  { %v83_v57 = vpop.permute.xlu0 %82 }
  0x8c   :  { %v88_v56 = vpop.permute.xlu1 %87 }
  0x8f   :  { %v93_v2 = vpop.permute.xlu0 %92 }
  0x91   :  { %v98_v63 = vpop.permute.xlu1 %97 }
  0x93   :  { %v103_v15 = vpop.permute.xlu0 %102 }
  0x95   :  { %v108_v12 = vpop.permute.xlu1 %107 }
  0x97   :  { %v113_v27 = vpop.permute.xlu0 %112 }
  0x99   :  { %v118_v24 = vpop.permute.xlu1 %117 }
  0x9b   :  { %v123_v40 = vpop.permute.xlu0 %122 }
  0x9d   :  { %v128_v37 = vpop.permute.xlu1 %127 }
  0xa1   :  { %v138_v49 = vpop.permute.xlu1 %137 }
  0xd7   :  { %v804_v58 = vpop.f32.mrb[0].mxu0 }
  0xd8   :  { %v261_v59 = vadd.f32 %v804_v58, %v68_v55  ;;  %v255_v60 = vpop.f32.mrb[1].mxu0 }
  0xd9   :  { %v256_v61 = vadd.f32 %v255_v60, %v63_v53  ;;  %v351_v60 = vld [vmem:[%s1291_s3 + $0x8] sm:$0xff] }
  0xda   :  { %v335_v62 = vmax.f32 %v261_v59, 0.0 }
  0xdb   :  { %v334_v0 = vmax.f32 %v256_v61, 0.0  ;;  %v807_v1 = vpop.f32.mrb[2].mxu0  ;;  %v352_v61 = vld [vmem:[%s1291_s3 + $0x10] sm:$0xff] }
  0xdc   :  { %v271_v3 = vadd.f32 %v807_v1, %v78_v54  ;;  %v265_v4 = vpop.f32.mrb[3].mxu0  ;;  %v356_v1 = vld [vmem:[%s1291_s3 + $0x30] sm:$0xff] }
  0xdd   :  { %v266_v5 = vadd.f32 %v265_v4, %v73_v52  ;;  %v917_v6 = vpack.c.bf16 %v335_v62, %v334_v0  ;;  %v133_v52 = vpop.permute.xlu0 %132  ;;  %v353_v62 = vld [vmem:[%s1291_s3 + $0x18] sm:$0xff]  ;;  %v355_v0 = vld [vmem:[%s1291_s3 + $0x28] sm:$0xff] }
  0xde   :  { %v337_v7 = vmax.f32 %v271_v3, 0.0  ;;  %v358_v3 = vld [vmem:[%s1291_s3 + $0x40] sm:$0xff]  ;;  %v359_v4 = vld [vmem:[%s1291_s3 + $0x48] sm:$0xff] }
  0xdf   :  { %v336_v8 = vmax.f32 %v266_v5, 0.0  ;;  %v810_v9 = vpop.f32.mrb[4].mxu0  ;;  %918 = vmatprep.subr.bf16.mxu1 %v917_v6  ;;  %v360_v5 = vld [vmem:[%s1291_s3 + $0x50] sm:$0xff] }
  0xe0   :  { %v281_v10 = vadd.f32 %v810_v9, %v88_v56  ;;  %v275_v11 = vpop.f32.mrb[5].mxu0  ;;  %920 = vmatpush3.bf16.msra.mxu1 %v917_v6  ;;  %v361_v6 = vld [vmem:[%s1291_s3 + $0x58] sm:$0xff]  ;;  %v364_v9 = vld [vmem:[%s1291_s3 + $0x70] sm:$0xff] }
  0xe1   :  { %v921_v13 = vpack.c.bf16 %v337_v7, %v336_v8  ;;  %v276_v14 = vadd.f32 %v275_v11, %v83_v57  ;;  %v362_v7 = vld [vmem:[%s1291_s3 + $0x60] sm:$0xff]  ;;  %v363_v8 = vld [vmem:[%s1291_s3 + $0x68] sm:$0xff]  ;;  %v1007_v11 = vmov 0.0|0.0  }
  0xe2   :  { %v339_v16 = vmax.f32 %v281_v10, 0.0  ;;  %v365_v10 = vld [vmem:[%s1291_s3 + $0x78] sm:$0xff]  ;;  %949 = vmatprep.subr.bf16.mxu0 %v1007_v11 }
  0xe3   :  { %v338_v17 = vmax.f32 %v276_v14, 0.0  ;;  %v813_v18 = vpop.f32.mrb[6].mxu0  ;;  %922 = vmatprep.subr.bf16.mxu1 %v921_v13  ;;  %v385_v14 = vpop.permute.xlu0 %384 }
  0xe4   :  { %v291_v19 = vadd.f32 %v813_v18, %v98_v63  ;;  %v285_v20 = vpop.f32.mrb[7].mxu0  ;;  %924 = vmatpush3.bf16.msra.mxu1 %v921_v13  ;;  %v354_v63 = vld [vmem:[%s1291_s3 + $0x20] sm:$0xff]  ;;  %v390_v13 = vpop.permute.xlu1 %389 }
  0xe5   :  { %v925_v21 = vpack.c.bf16 %v339_v16, %v338_v17  ;;  %v286_v22 = vadd.f32 %v285_v20, %v93_v2  ;;  %v357_v2 = vld [vmem:[%s1291_s3 + $0x38] sm:$0xff] }
  0xe6   :  { %v341_v23 = vmax.f32 %v291_v19, 0.0 }
  0xe7   :  { %v340_v25 = vmax.f32 %v286_v22, 0.0  ;;  %v816_v26 = vpop.f32.mrb[8].mxu0  ;;  %926 = vmatprep.subr.bf16.mxu1 %v925_v21  ;;  %v395_v16 = vpop.permute.xlu0 %394 }
  0xe8   :  { %v301_v28 = vadd.f32 %v816_v26, %v108_v12  ;;  %v295_v29 = vpop.f32.mrb[9].mxu0  ;;  %928 = vmatpush3.bf16.msra.mxu1 %v925_v21  ;;  %v1009_v12 = vmov 0.0  }
  0xe9   :  { %v929_v30 = vpack.c.bf16 %v341_v23, %v340_v25  ;;  %v296_v31 = vadd.f32 %v295_v29, %v103_v15  ;;  %914 = vmatprep.mubr.msk.f32.mxu0 %vm1008_vm1, %v1009_v12  ;;  %v400_v15 = vpop.permute.xlu1 %399 }
  0xea   :  { %v343_v32 = vmax.f32 %v301_v28, 0.0 }
  0xeb   :  { %v342_v33 = vmax.f32 %v296_v31, 0.0  ;;  %v819_v34 = vpop.f32.mrb[10].mxu0  ;;  %930 = vmatprep.subr.bf16.mxu1 %v929_v30  ;;  %v405_v18 = vpop.permute.xlu0 %404 }
  0xec   :  { %v311_v35 = vadd.f32 %v819_v34, %v118_v24  ;;  %v305_v36 = vpop.f32.mrb[11].mxu0  ;;  %932 = vmatpush3.bf16.msra.mxu1 %v929_v30 }
  0xed   :  { %v933_v38 = vpack.c.bf16 %v343_v32, %v342_v33  ;;  %v306_v39 = vadd.f32 %v305_v36, %v113_v27  ;;  %v410_v17 = vpop.permute.xlu1 %409 }
  0xee   :  { %v345_v41 = vmax.f32 %v311_v35, 0.0 }
  0xef   :  { %v344_v42 = vmax.f32 %v306_v39, 0.0  ;;  %v822_v43 = vpop.f32.mrb[12].mxu0  ;;  %934 = vmatprep.subr.bf16.mxu1 %v933_v38  ;;  %v415_v27 = vpop.permute.xlu0 %414 }
  0xf0   :  { %v321_v44 = vadd.f32 %v822_v43, %v128_v37  ;;  %v315_v45 = vpop.f32.mrb[13].mxu0  ;;  %936 = vmatpush3.bf16.msra.mxu1 %v933_v38 }
  0xf1   :  { %v937_v46 = vpack.c.bf16 %v345_v41, %v344_v42  ;;  %v316_v47 = vadd.f32 %v315_v45, %v123_v40  ;;  %v420_v24 = vpop.permute.xlu1 %419 }
  0xf2   :  { %v347_v48 = vmax.f32 %v321_v44, 0.0 }
  0xf3   :  { %v346_v50 = vmax.f32 %v316_v47, 0.0  ;;  %v825_v51 = vpop.f32.mrb[14].mxu0  ;;  %938 = vmatprep.subr.bf16.mxu1 %v937_v46  ;;  %v425_v40 = vpop.permute.xlu0 %424 }
  0xf4   :  { %v331_v53 = vadd.f32 %v825_v51, %v138_v49  ;;  %v325_v54 = vpop.f32.mrb[15].mxu0  ;;  %940 = vmatpush3.bf16.msra.mxu1 %v937_v46 }
  0xf5   :  { %v941_v55 = vpack.c.bf16 %v347_v48, %v346_v50  ;;  %v326_v56 = vadd.f32 %v325_v54, %v133_v52  ;;  %v430_v37 = vpop.permute.xlu1 %429 }
  0xf6   :  { %v349_v57 = vmax.f32 %v331_v53, 0.0 }
  0xf7   :  { %v348_v58 = vmax.f32 %v326_v56, 0.0  ;;  %942 = vmatprep.subr.bf16.mxu1 %v941_v55  ;;  %v435_v52 = vpop.permute.xlu0 %434 }
  0xf8   :  { %944 = vmatpush3.bf16.msra.mxu1 %v941_v55 }
  0xf9   :  { %v945_v59 = vpack.c.bf16 %v349_v57, %v348_v58  ;;  %v440_v49 = vpop.permute.xlu1 %439 }
  0xfb   :  { %946 = vmatprep.subr.bf16.mxu1 %v945_v59 }
  0xfc   :  { %948 = vmatpush3.bf16.msra.mxu1 %v945_v59 }
  0xff   :  { %859 = vmatmul.mubr.f32.vlgmr.msra.gmra.mrb[0].mxu1 %v351_v60 }
 0x100   :  { %861 = vmatprep.mubr.f32.mxu1 %v352_v61 }
 0x103   :  { %862 = vmatmul.mubr.f32.gmra.mrb[2].mxu1 %v353_v62  ;;  %v450_v62 = vpop.permute.xlu1 %449 }
 0x104   :  { %864 = vmatprep.mubr.f32.mxu1 %v354_v63 }
 0x107   :  { %865 = vmatmul.mubr.f32.gmra.mrb[4].mxu1 %v355_v0 }
 0x108   :  { %867 = vmatprep.mubr.f32.mxu1 %v356_v1  ;;  %v445_v1 = vpop.permute.xlu0 %444 }
 0x10b   :  { %868 = vmatmul.mubr.f32.gmra.mrb[6].mxu1 %v357_v2 }
 0x10c   :  { %870 = vmatprep.mubr.f32.mxu1 %v358_v3 }
 0x10f   :  { %871 = vmatmul.mubr.f32.gmra.mrb[8].mxu1 %v359_v4 }
 0x110   :  { %873 = vmatprep.mubr.f32.mxu1 %v360_v5 }
 0x113   :  { %874 = vmatmul.mubr.f32.gmra.mrb[10].mxu1 %v361_v6 }
 0x114   :  { %876 = vmatprep.mubr.f32.mxu1 %v362_v7 }
 0x117   :  { %877 = vmatmul.mubr.f32.gmra.mrb[12].mxu1 %v363_v8 }
 0x118   :  { %879 = vmatprep.mubr.f32.mxu1 %v364_v9 }
 0x11b   :  { %880 = vmatmul.mubr.f32.gmra.mrb[14].mxu1 %v365_v10  ;;  %v460_v10 = vpop.permute.xlu1 %459 }
 0x1d2   :  { %v860_v19 = vpop.f32.mrb[0].mxu1 }
 0x1d3   :  { %v534_v20 = vadd.f32 %v860_v19, %v390_v13  ;;  %v528_v21 = vpop.f32.mrb[1].mxu1 }
 0x1d4   :  { %v529_v22 = vadd.f32 %v528_v21, %v385_v14  ;;  %v455_v14 = vpop.permute.xlu0 %454 }
 0x1d5   :  { %v608_v23 = vmax.f32 %v534_v20, 0.0 }
 0x1d6   :  { %v607_v25 = vmax.f32 %v529_v22, 0.0  ;;  %v863_v26 = vpop.f32.mrb[2].mxu1  ;;  %v623_v22 = vld [vmem:[%s1293_s5] sm:$0xf] }
 0x1d7   :  { %v544_v28 = vadd.f32 %v863_v26, %v400_v15  ;;  %v538_v29 = vpop.f32.mrb[3].mxu1 }
 0x1d8   :  { %v950_v30 = vpack.c.bf16 %v608_v23, %v607_v25  ;;  %v539_v31 = vadd.f32 %v538_v29, %v395_v16  ;;  %v628_v23 = vpop.permute.xlu0 %627 }
 0x1d9   :  { %v610_v32 = vmax.f32 %v544_v28, 0.0 }
 0x1da   :  { %v609_v33 = vmax.f32 %v539_v31, 0.0  ;;  %v866_v34 = vpop.f32.mrb[4].mxu1  ;;  %951 = vmatpush3.bf16.msra.mxu0 %v950_v30 }
 0x1db   :  { %v554_v35 = vadd.f32 %v866_v34, %v410_v17  ;;  %v548_v36 = vpop.f32.mrb[5].mxu1  ;;  %952 = vmatprep.subr.bf16.mxu0 %v1007_v11 }
 0x1dc   :  { %v953_v38 = vpack.c.bf16 %v610_v32, %v609_v33  ;;  %v549_v39 = vadd.f32 %v548_v36, %v405_v18 }
 0x1dd   :  { %v612_v41 = vmax.f32 %v554_v35, 0.0 }
 0x1de   :  { %v611_v42 = vmax.f32 %v549_v39, 0.0  ;;  %v869_v43 = vpop.f32.mrb[6].mxu1  ;;  %954 = vmatpush3.bf16.msra.mxu0 %v953_v38 }
 0x1df   :  { %v564_v44 = vadd.f32 %v869_v43, %v420_v24  ;;  %v558_v45 = vpop.f32.mrb[7].mxu1  ;;  %955 = vmatprep.subr.bf16.mxu0 %v1007_v11 }
 0x1e0   :  { %v956_v46 = vpack.c.bf16 %v612_v41, %v611_v42  ;;  %v559_v47 = vadd.f32 %v558_v45, %v415_v27 }
 0x1e1   :  { %v614_v48 = vmax.f32 %v564_v44, 0.0 }
 0x1e2   :  { %v613_v50 = vmax.f32 %v559_v47, 0.0  ;;  %v872_v51 = vpop.f32.mrb[8].mxu1  ;;  %957 = vmatpush3.bf16.msra.mxu0 %v956_v46 }
 0x1e3   :  { %v574_v53 = vadd.f32 %v872_v51, %v430_v37  ;;  %v568_v54 = vpop.f32.mrb[9].mxu1  ;;  %958 = vmatprep.subr.bf16.mxu0 %v1007_v11 }
 0x1e4   :  { %v959_v55 = vpack.c.bf16 %v614_v48, %v613_v50  ;;  %v569_v56 = vadd.f32 %v568_v54, %v425_v40 }
 0x1e5   :  { %v616_v57 = vmax.f32 %v574_v53, 0.0 }
 0x1e6   :  { %v615_v58 = vmax.f32 %v569_v56, 0.0  ;;  %v875_v59 = vpop.f32.mrb[10].mxu1  ;;  %960 = vmatpush3.bf16.msra.mxu0 %v959_v55 }
 0x1e7   :  { %v584_v60 = vadd.f32 %v875_v59, %v440_v49  ;;  %v578_v61 = vpop.f32.mrb[11].mxu1  ;;  %961 = vmatprep.subr.bf16.mxu0 %v1007_v11 }
 0x1e8   :  { %v962_v63 = vpack.c.bf16 %v616_v57, %v615_v58  ;;  %v579_v0 = vadd.f32 %v578_v61, %v435_v52 }
 0x1e9   :  { %v618_v2 = vmax.f32 %v584_v60, 0.0 }
 0x1ea   :  { %v617_v3 = vmax.f32 %v579_v0, 0.0  ;;  %v878_v4 = vpop.f32.mrb[12].mxu1  ;;  %963 = vmatpush3.bf16.msra.mxu0 %v962_v63 }
 0x1eb   :  { %v594_v5 = vadd.f32 %v878_v4, %v450_v62  ;;  %v588_v6 = vpop.f32.mrb[13].mxu1  ;;  %964 = vmatprep.subr.bf16.mxu0 %v1007_v11 }
 0x1ec   :  { %v965_v7 = vpack.c.bf16 %v618_v2, %v617_v3  ;;  %v589_v8 = vadd.f32 %v588_v6, %v445_v1 }
 0x1ed   :  { %v620_v9 = vmax.f32 %v594_v5, 0.0 }
 0x1ee   :  { %v619_v12 = vmax.f32 %v589_v8, 0.0  ;;  %v881_v13 = vpop.f32.mrb[14].mxu1  ;;  %966 = vmatpush3.bf16.msra.mxu0 %v965_v7 }
 0x1ef   :  { %v604_v15 = vadd.f32 %v881_v13, %v460_v10  ;;  %v598_v16 = vpop.f32.mrb[15].mxu1  ;;  %967 = vmatprep.subr.bf16.mxu0 %v1007_v11 }
 0x1f0   :  { %v968_v17 = vpack.c.bf16 %v620_v9, %v619_v12  ;;  %v599_v18 = vadd.f32 %v598_v16, %v455_v14 }
 0x1f1   :  { %v622_v19 = vmax.f32 %v604_v15, 0.0 }
 0x1f2   :  { %v621_v20 = vmax.f32 %v599_v18, 0.0  ;;  %969 = vmatpush3.bf16.msra.mxu0 %v968_v17 }
 0x1f3   :  { %970 = vmatprep.subr.bf16.mxu0 %v1007_v11 }
 0x1f4   :  { %v971_v21 = vpack.c.bf16 %v622_v19, %v621_v20 }
 0x1f6   :  { %972 = vmatpush3.bf16.msra.mxu0 %v971_v21 }
 0x1f9   :  { %915 = vmatmul.mubr.f32.vlgmr.msra.gmra.mrb[16].mxu0 %v623_v22 }
 0x2cc   :  { %v696_v24 = vpop.f32.mrb[16].mxu0 }
 0x2cd   :  { %v697_v25 = vadd.f32 %v696_v24, %v628_v23  ;;  %v916_v26 = vpop.f32.mrb[17].mxu0 }
 0x2cf   :  { %980 = vtanh.f32 %v697_v25 }
 0x2d9   :  { %v981_v27 = vpop.eup %980 }
 0x2da   :  { %v701_v28 = vadd.f32 1.0, %v981_v27 }
 0x2dc   :  { %v702_v29 = vmul.f32 90.0, %v701_v28 }
 0x2de   :  { %703 = vst [vmem:[#allocation2] sm:$0xf] %v702_v29 }
 0x2df   :  { %993 = shalt.err (!%p990_p4)
}
 0x2e0   :  { %s994_s8 = scalar_lea.hbm %s1295_s7, 64 }
 0x2e1   :  { %p995_p5 = scmp.ne.s32.totalorder %s1295_s7, %s994_s8  ;;  %p998_p6 = scmp.lt.u32.totalorder %s994_s8, %s1295_s7 }
 0x2e3   :  { %p1000_p7 = pnand %p998_p6, %p995_p5 }
 0x2e5   :  { %1003 = shalt.err (!%p1000_p7)
}
 0x2e6   :  { %713 = dma.vmem_to_hbm [thread:$0]  %s711_s28, 64, %s1295_s7, [#allocation3]  }
 0x2e7   :  { %1004 = dma.done.wait [#allocation3], 64  }
 0x2e8   :  { %1005 = vsyncadd [#allocation3], 4294967232 }
 0x2e9   :  { %717 = vsyncpa [#allocation3], 1 }

</bundles_post_ra>
